<compile_context>
chip_gen: v6e
topology: v6e:2x2x1
jax: 0.10.0
libtpu: 0.0.40
codegen_flags: <defaults>
</compile_context>

<pallas_src>
import functools
import math

import jax
import jax.numpy as jnp
from jax.experimental import pallas as pl
from jax.experimental.pallas import tpu as pltpu


# ----------------------------------------------------------------------------- helpers
def _round_up(x, m):
    return (x + m - 1) // m * m


def _pad_axis(a, axis, new_size):
    pad = [(0, 0)] * a.ndim
    pad[axis] = (0, new_size - a.shape[axis])
    return jnp.pad(a, pad)


def _vmem_limit_bytes(arrs):
    """Scoped-VMEM limit sized from the whole-array operands (all gridless)."""
    need = 0
    for a in arrs:
        need += math.prod(a.shape) * jnp.dtype(a.dtype).itemsize
    return int(min(64 * 2**20, max(32 * 2**20, 2 * need + (4 << 20))))


# ----------------------------------------------------------------------------- packing
def pack_attention_cell_params(params, input_size, mxu_dtype=jnp.float32):
    """Trace-time weight packing: reorder gates (i,f,o,g), pad H to 128-multiple,
    transpose for MXU, cast matmul operands to mxu_dtype."""
    D = input_size
    H = params['w_h2h'].shape[0]
    Hp = max(_round_up(H, 128), 128)
    f32 = jnp.float32

    # --- attention weights (output dim padded H -> Hp, lane-dense) ---
    w_i2h_T = _pad_axis(params['w_i2h'], 0, Hp).T.astype(mxu_dtype)                 # [D, Hp]
    w_h2h_T = _pad_axis(_pad_axis(params['w_h2h'], 0, Hp), 1, Hp).T.astype(mxu_dtype)  # [Hp, Hp]
    b_h2h = _pad_axis(params['b_h2h'], 0, Hp)[None, :].astype(f32)                  # [1, Hp]
    w_score = _pad_axis(params['w_score'], 1, Hp).astype(f32)                       # [1, Hp]
    attn_vec = jnp.concatenate([b_h2h, w_score], axis=0)                            # [2, Hp]

    # --- LSTM gate weights: torch order (i,f,g,o) -> (i,f,o,g) so the single
    #     tanh block is the LAST Hp lanes; each block zero-padded H -> Hp ---
    def gate_pack(w, axis=0):
        i, f, g, o = jnp.split(w, 4, axis=axis)
        return jnp.concatenate([_pad_axis(b, axis, Hp) for b in (i, f, o, g)], axis=axis)

    w_ih = params['w_ih']                                                           # [4H, D+E]
    wx_T = gate_pack(w_ih[:, :D], axis=0).T.astype(mxu_dtype)                       # [D, 4Hp]
    w_emb = gate_pack(w_ih[:, D:], axis=0).astype(f32)                              # [4Hp, E]
    whh_T = _pad_axis(gate_pack(params['w_hh'], axis=0), 1, Hp).T.astype(mxu_dtype)  # [Hp, 4Hp]
    b_gates = gate_pack(params['b_ih'] + params['b_hh'], axis=0).astype(f32)        # [4Hp]

    return dict(D=D, H=H, Hp=Hp, mxu_dtype=mxu_dtype,
                w_i2h_T=w_i2h_T, w_h2h_T=w_h2h_T, attn_vec=attn_vec,
                wx_T=wx_T, w_emb=w_emb, whh_T=whh_T, b_gates=b_gates)


# ----------------------------------------------------------------------------- step-invariant projection
def _i2h_proj_kernel(H_ref, w_ref, out_ref):
    B, Tp, D = H_ref.shape
    Hflat = H_ref[...].reshape(B * Tp, D)            # Tp % 8 == 0 -> layout-preserving
    proj = jnp.dot(Hflat, w_ref[...], preferred_element_type=jnp.float32)
    out_ref[...] = proj.reshape(B, Tp, out_ref.shape[-1]).astype(out_ref.dtype)


def precompute_attention_proj(batch_H, packed):
    """batch_H_proj = i2h(batch_H).  Step-invariant: call once per sequence and
    reuse across all decode steps (the review's highest-value change)."""
    B, T, D = batch_H.shape
    Tp = _round_up(max(T, 8), 8)
    Hp = packed['Hp']
    mxu_dtype = packed['mxu_dtype']

    batch_H_pad = _pad_axis(batch_H, 1, Tp).astype(mxu_dtype)        # [B, Tp, D]

    vmem = pl.BlockSpec(memory_space=pltpu.MemorySpace.VMEM)
    out_sd = jax.ShapeDtypeStruct((B, Tp, Hp), mxu_dtype)
    proj = pl.pallas_call(
        _i2h_proj_kernel,
        out_shape=out_sd,
        in_specs=[vmem, vmem],
        out_specs=vmem,
        compiler_params=pltpu.CompilerParams(
            vmem_limit_bytes=_vmem_limit_bytes([batch_H_pad, packed['w_i2h_T'], out_sd])),
    )(batch_H_pad, packed['w_i2h_T'])

    return dict(batch_H=batch_H_pad, proj=proj, T=T, Tp=Tp)


# ----------------------------------------------------------------------------- per-step kernel
def _attention_step_kernel(h_ref, c_ref, bH_ref, proj_ref, w_h2h_ref, attn_vec_ref,
                           wx_ref, whh_ref, gate_bias_ref,
                           h_out_ref, c_out_ref, alpha_ref, *, t_valid):
    f32 = jnp.float32
    B, Tp, D = bH_ref.shape
    Hp = h_ref.shape[1]
    mxu = w_h2h_ref.dtype

    h = h_ref[...]                                   # [B, Hp] f32
    c = c_ref[...]                                   # [B, Hp] f32
    b_h2h = attn_vec_ref[0:1, :]                     # [1, Hp]
    w_score = attn_vec_ref[1:2, :]                   # [1, Hp]

    # prev_hidden_proj = h2h(h).  (i2h(batch_H) was hoisted; proj_ref holds it.)
    hp = jnp.dot(h.astype(mxu), w_h2h_ref[...], preferred_element_type=f32) + b_h2h  # [B, Hp]

    t = jnp.tanh(proj_ref[...].astype(f32) + hp[:, None, :])                         # [B, Tp, Hp]

    # score(...) has out_features == 1: VPU multiply + lane reduce (no N=1 MXU matmul)
    e = jnp.sum(t * w_score, axis=-1)                                                # [B, Tp]
    if Tp != t_valid:  # padded time steps must not receive attention mass
        tmask = jax.lax.broadcasted_iota(jnp.int32, e.shape, 1) < t_valid
        e = jnp.where(tmask, e, jnp.float32(-1e30))

    # softmax over time (torch dim=1); approx reciprocal lands on the EUP slot
    m = jnp.max(e, axis=1, keepdims=True)
    p = jnp.exp(e - m)
    alpha = p * pl.reciprocal(jnp.sum(p, axis=1, keepdims=True), approx=True)        # [B, Tp]
    alpha_ref[...] = alpha                                                           # lane-dense store

    # context = bmm(alpha^T, batch_H).squeeze(1)
    context = jnp.sum(alpha[:, :, None] * bH_ref[...].astype(f32), axis=1)           # [B, D]

    # LSTMCell gates; the one-hot embedding contribution is pre-gathered into gate_bias
    gates = (jnp.dot(context.astype(mxu), wx_ref[...], preferred_element_type=f32)
             + jnp.dot(h.astype(mxu), whh_ref[...], preferred_element_type=f32)
             + gate_bias_ref[...])                                                   # [B, 4Hp]

    # gate blocks were reordered host-side to (i, f, o, g): sigmoid over 3*Hp lanes,
    # tanh only over the last Hp lanes (half the EUP work of the old where-trick)
    sg = jax.nn.sigmoid(gates[:, :3 * Hp])
    i_g = sg[:, 0 * Hp:1 * Hp]
    f_g = sg[:, 1 * Hp:2 * Hp]
    o_g = sg[:, 2 * Hp:3 * Hp]
    g_g = jnp.tanh(gates[:, 3 * Hp:])

    c_new = f_g * c + i_g * g_g
    h_out_ref[...] = o_g * jnp.tanh(c_new)
    c_out_ref[...] = c_new


def attention_cell_step(prev_hidden, proj_pack, char_onehots, packed, char_ids=None):
    """One decode step.  `proj_pack` comes from precompute_attention_proj."""
    h, c = prev_hidden
    B = h.shape[0]
    H, Hp = packed['H'], packed['Hp']
    T, Tp = proj_pack['T'], proj_pack['Tp']
    f32 = jnp.float32

    h_pad = _pad_axis(h.astype(f32), 1, Hp)                          # [B, Hp]
    c_pad = _pad_axis(c.astype(f32), 1, Hp)                          # [B, Hp]

    # one-hot @ W_emb^T is a gather in disguise: select w_ih embedding columns
    # at trace time and fold them into a per-row gate bias (b_ih + b_hh + emb row)
    if char_ids is not None:
        emb = jnp.take(packed['w_emb'], char_ids, axis=1).T          # [B, 4Hp]
    else:
        emb = char_onehots.astype(f32) @ packed['w_emb'].T           # [B, 4Hp]
    gate_bias = emb + packed['b_gates'][None, :]                     # [B, 4Hp]

    vmem = pl.BlockSpec(memory_space=pltpu.MemorySpace.VMEM)
    out_shape = (
        jax.ShapeDtypeStruct((B, Hp), f32),    # h_new (padded)
        jax.ShapeDtypeStruct((B, Hp), f32),    # c_new (padded)
        jax.ShapeDtypeStruct((B, Tp), f32),    # alpha (lane-dense)
    )
    inputs = (h_pad, c_pad, proj_pack['batch_H'], proj_pack['proj'],
              packed['w_h2h_T'], packed['attn_vec'], packed['wx_T'],
              packed['whh_T'], gate_bias)

    h_new, c_new, alpha = pl.pallas_call(
        functools.partial(_attention_step_kernel, t_valid=T),
        out_shape=out_shape,
        in_specs=[vmem] * len(inputs),
        out_specs=(vmem, vmem, vmem),
        compiler_params=pltpu.CompilerParams(
            vmem_limit_bytes=_vmem_limit_bytes(list(inputs) + list(out_shape))),
    )(*inputs)

    # slice H padding; trailing singleton of torch's [B, T, 1] alpha is free here
    return (h_new[:, :H], c_new[:, :H]), alpha[:, :T, None]


def attention_cell(prev_hidden, batch_H, char_onehots, params, *,
                   char_ids=None, mxu_dtype=jnp.float32):
    """Module-equivalent convenience wrapper (pack + precompute + one step).
    In a decode loop, call pack_attention_cell_params / precompute_attention_proj
    once and attention_cell_step per step."""
    D = batch_H.shape[-1]
    packed = pack_attention_cell_params(params, D, mxu_dtype)
    proj_pack = precompute_attention_proj(batch_H, packed)
    return attention_cell_step(prev_hidden, proj_pack, char_onehots, packed, char_ids)


# ----------------------------------------------------------------------------- reference
def reference_attention_cell(prev_hidden, batch_H, char_onehots, params):
    """Pure-JAX reference mirroring the PyTorch module semantics."""
    h, c = prev_hidden
    Hd = h.shape[1]
    Hp = jnp.einsum('btd,hd->bth', batch_H, params['w_i2h'])
    hp = h @ params['w_h2h'].T + params['b_h2h']
    e = jnp.einsum('bth,oh->bto', jnp.tanh(Hp + hp[:, None, :]), params['w_score'])
    alpha = jax.nn.softmax(e, axis=1)                       # [B, T, 1]
    context = jnp.einsum('bto,btd->bd', alpha, batch_H)     # squeeze(1)
    concat = jnp.concatenate([context, char_onehots], axis=1)
    gates = concat @ params['w_ih'].T + params['b_ih'] + h @ params['w_hh'].T + params['b_hh']
    i_g = jax.nn.sigmoid(gates[:, 0 * Hd:1 * Hd])
    f_g = jax.nn.sigmoid(gates[:, 1 * Hd:2 * Hd])
    g_g = jnp.tanh(gates[:, 2 * Hd:3 * Hd])
    o_g = jax.nn.sigmoid(gates[:, 3 * Hd:4 * Hd])
    c_new = f_g * c + i_g * g_g
    h_new = o_g * jnp.tanh(c_new)
    return (h_new, c_new), alpha


def init_params(key, input_size, hidden_size, num_embeddings):
    ks = jax.random.split(key, 8)
    scale = 0.1
    return {
        'w_i2h':   scale * jax.random.normal(ks[0], (hidden_size, input_size), jnp.float32),
        'w_h2h':   scale * jax.random.normal(ks[1], (hidden_size, hidden_size), jnp.float32),
        'b_h2h':   scale * jax.random.normal(ks[2], (hidden_size,), jnp.float32),
        'w_score': scale * jax.random.normal(ks[3], (1, hidden_size), jnp.float32),
        'w_ih':    scale * jax.random.normal(ks[4], (4 * hidden_size, input_size + num_embeddings), jnp.float32),
        'b_ih':    scale * jax.random.normal(ks[5], (4 * hidden_size,), jnp.float32),
        'w_hh':    scale * jax.random.normal(ks[6], (4 * hidden_size, hidden_size), jnp.float32),
        'b_hh':    scale * jax.random.normal(ks[7], (4 * hidden_size,), jnp.float32),
    }


if __name__ == "__main__":
    B, T = 2, 8
    input_size, hidden_size, num_embeddings = 32, 32, 8

    key = jax.random.PRNGKey(0)
    k_param, k_h, k_c, k_H, k_e = jax.random.split(key, 5)

    params = init_params(k_param, input_size, hidden_size, num_embeddings)

    h0 = jax.random.normal(k_h, (B, hidden_size), jnp.float32)
    c0 = jax.random.normal(k_c, (B, hidden_size), jnp.float32)
    batch_H = jax.random.normal(k_H, (B, T, input_size), jnp.float32)
    char_ids = jax.random.randint(k_e, (B,), 0, num_embeddings)
    char_onehots = jax.nn.one_hot(char_ids, num_embeddings, dtype=jnp.float32)

    (h_ref, c_ref), alpha_ref = reference_attention_cell((h0, c0), batch_H, char_onehots, params)

    # --- f32 path (approx-recip softmax => slightly relaxed tolerance) ---
    (h_new, c_new), alpha = attention_cell((h0, c0), batch_H, char_onehots, params,
                                           char_ids=char_ids, mxu_dtype=jnp.float32)
    jax.block_until_ready((h_new, c_new, alpha))
    assert jnp.allclose(h_new, h_ref, atol=5e-3, rtol=5e-3)
    assert jnp.allclose(c_new, c_ref, atol=5e-3, rtol=5e-3)
    assert jnp.allclose(alpha, alpha_ref, atol=5e-3, rtol=5e-3)

    # --- bf16 MXU path (halves DMA bytes for batch_H / proj / weights) ---
    (h_b, c_b), alpha_b = attention_cell((h0, c0), batch_H, char_onehots, params,
                                         char_ids=char_ids, mxu_dtype=jnp.bfloat16)
    jax.block_until_ready((h_b, c_b, alpha_b))
    assert jnp.allclose(h_b, h_ref, atol=5e-2, rtol=5e-2)
    assert jnp.allclose(c_b, c_ref, atol=5e-2, rtol=5e-2)
    assert jnp.allclose(alpha_b, alpha_ref, atol=5e-2, rtol=5e-2)

    # --- decode-loop usage: pack weights + hoist the i2h projection once,
    #     then run several steps reusing them (the review's structural point) ---
    packed = pack_attention_cell_params(params, input_size, jnp.float32)
    proj_pack = precompute_attention_proj(batch_H, packed)
    state, state_ref = (h0, c0), (h0, c0)
    for step in range(3):
        ids = (char_ids + step) % num_embeddings
        oh = jax.nn.one_hot(ids, num_embeddings, dtype=jnp.float32)
        state, _ = attention_cell_step(state, proj_pack, oh, packed, char_ids=ids)
        state_ref, _ = reference_attention_cell(state_ref, batch_H, oh, params)
    jax.block_until_ready(state)
    assert jnp.allclose(state[0], state_ref[0], atol=1e-2, rtol=1e-2)
    assert jnp.allclose(state[1], state_ref[1], atol=1e-2, rtol=1e-2)

    print("KERNEL_OK")
</pallas_src>

<mosaic_0001>
module attributes {stable_mosaic.version = 11 : i64} {
  func.func @_i2h_proj_kernel(%arg0: memref<2x8x32xf32, #tpu.memory_space<vmem>>, %arg1: memref<32x128xf32, #tpu.memory_space<vmem>>, %arg2: memref<2x8x128xf32, #tpu.memory_space<vmem>>) attributes {dimension_semantics = [], scalar_prefetch = 0 : i64, scratch_operands = 0 : i64, tpu.core_type = #tpu.core_type<tc>} {
    %c0 = arith.constant 0 : index
    %c0_0 = arith.constant 0 : index
    %c0_1 = arith.constant 0 : index
    %0 = vector.load %arg0[%c0, %c0_0, %c0_1] : memref<2x8x32xf32, #tpu.memory_space<vmem>>, vector<2x8x32xf32>
    %1 = vector.shape_cast %0 : vector<2x8x32xf32> to vector<16x32xf32>
    %c0_2 = arith.constant 0 : index
    %c0_3 = arith.constant 0 : index
    %2 = vector.load %arg1[%c0_2, %c0_3] : memref<32x128xf32, #tpu.memory_space<vmem>>, vector<32x128xf32>
    %cst = arith.constant dense<0.000000e+00> : vector<16x128xf32>
    %3 = tpu.matmul %1, %2, %cst {dimension_numbers = #tpu.dot_dimension_numbers<[1], [0], [0], [1], [0, 0, 1, 1], [], []>} : vector<16x32xf32>, vector<32x128xf32>, vector<16x128xf32> -> vector<16x128xf32>
    %4 = vector.shape_cast %3 : vector<16x128xf32> to vector<2x8x128xf32>
    %c0_4 = arith.constant 0 : index
    %c0_5 = arith.constant 0 : index
    %c0_6 = arith.constant 0 : index
    %5 = vector.load %arg2[%c0_4, %c0_5, %c0_6] : memref<2x8x128xf32, #tpu.memory_space<vmem>>, vector<2x8x128xf32>
    tpu.vector_store %arg2[%c0_4, %c0_5, %c0_6], %4 {strides = array<i32>} : memref<2x8x128xf32, #tpu.memory_space<vmem>>, vector<2x8x128xf32>,
    return
  }
}

</mosaic_0001>

<bundles_post_ra>
// kernel: tpu_custom_call.1
= control target key start
LH: loop header
LB: loop body
LE: loop exit
PB: predicated region body
PF: predicated region fallthrough
CT: control target
= control target key end

     0   :  { %7 = vsyncpa [#allocation3], 0  ;;  %s278_s0 = inlined_call_operand.hbm [shape: f32[2,8,32], index: 0, kind: input, shape index: {}]   ;;  %s279_s1 = inlined_call_operand.hbm [shape: f32[32,128], index: 1, kind: input, shape index: {}]   ;;  %s280_s2 = inlined_call_operand.hbm [shape: f32[2,8,128], index: 2, kind: output, shape index: {}]  }
   0x1   :  { %8 = vsyncpa [#allocation6], 0 }
   0x2   :  { %9 = vsyncpa [#allocation4], 0  ;;  %s238_s9 = smov [#allocation2]  }
   0x3   :  { %s15_s10 = sshll.u32 %s238_s9, 4  ;;  %s16_s10 = int_to_ptr.vmem [resolvable:$true] %s15_s10 }
   0x4   :  { %s180_s11 = scalar_lea.vmem %s16_s10, 256  ;;  %p185_p1 = scmp.lt.s32.totalorder %s16_s10, %s16_s10 }
   0x5   :  { %p181_p0 = scmp.ne.s32.totalorder %s16_s10, %s180_s11  ;;  %p186_p2 = scmp.lt.s32.totalorder %s180_s11, %s180_s11 }
   0x7   :  { %p187_p3 = por %p186_p2, %p185_p1 }
   0x9   :  { %p188_p4 = pnand %p187_p3, %p181_p0 }
   0xb   :  { %191 = shalt.err (!%p188_p4)
}
   0xc   :  { %s239_s12 = smov 128   ;;  %s240_s13 = smov 8  }
   0xd   :  { %21 = dma.hbm_to_vmem [thread:$0]  %s278_s0, 256, %s16_s10, [#allocation3], %s239_s12, %s239_s12, %s240_s13  }
   0xe   :  { %s241_s16 = smov [#allocation5]  }
   0xf   :  { %s27_s17 = sshll.u32 %s241_s16, 4  ;;  %s28_s17 = int_to_ptr.vmem [resolvable:$true] %s27_s17 }
  0x10   :  { %s200_s18 = scalar_lea.vmem %s28_s17, 512  ;;  %p205_p6 = scmp.lt.s32.totalorder %s28_s17, %s28_s17 }
  0x11   :  { %p201_p5 = scmp.ne.s32.totalorder %s28_s17, %s200_s18  ;;  %p206_p7 = scmp.lt.s32.totalorder %s200_s18, %s200_s18 }
  0x13   :  { %p207_p8 = por %p206_p7, %p205_p6 }
  0x15   :  { %p208_p9 = pnand %p207_p8, %p201_p5 }
  0x17   :  { %211 = shalt.err (!%p208_p9)
}
  0x18   :  { %33 = dma.hbm_to_vmem [thread:$0]  %s279_s1, 512, %s28_s17, [#allocation6], %s239_s12, %s239_s12, %s240_s13  }
  0x19   :  { %232 = dma.done.wait [#allocation3], 256  }
  0x1a   :  { %233 = vsyncadd [#allocation3], 4294967040 }
  0x1b   :  { %234 = dma.done.wait [#allocation6], 512  }
  0x1c   :  { %235 = vsyncadd [#allocation6], 4294966784  ;;  %vm46_vm0 = vcmask 261120   ;;  %v45_v0 = vld [vmem:[#allocation5 + $0x18] sm:$0xff]  ;;  %v44_v1 = vld [vmem:[#allocation5 + $0x10] sm:$0xff]  ;;  %s242_s0 = smov [#allocation7]  }
  0x1d   :  { %156 = vmatprep.subr.mxu0 %v45_v0  ;;  %v40_v2 = vld [vmem:[#allocation2] sm:$0xff]  ;;  %v43_v3 = vld [vmem:[#allocation5 + $0x8] sm:$0xff]  ;;  %v42_v4 = vld [vmem:[#allocation5] sm:$0xff]  ;;  %s135_s1 = sshll.u32 %s242_s0, 4  ;;  %s136_s1 = int_to_ptr.vmem [resolvable:$true] %s135_s1 }
  0x1e   :  { %157 = vmatpush3.msra.mxu0 %v45_v0  ;;  %164 = vmatprep.mubr.msk.f32.mxu0 %vm46_vm0, %v40_v2  ;;  %v41_v5 = vld [vmem:[#allocation2 + $0x8] sm:$0xff]  ;;  %s212_s21 = scalar_lea.vmem %s136_s1, 256  ;;  %p217_p11 = scmp.lt.s32.totalorder %s136_s1, %s136_s1 }
  0x1f   :  { %158 = vmatprep.subr.mxu0 %v44_v1  ;;  %p213_p10 = scmp.ne.s32.totalorder %s136_s1, %s212_s21  ;;  %p218_p12 = scmp.lt.s32.totalorder %s212_s21, %s212_s21 }
  0x20   :  { %159 = vmatpush3.msra.mxu0 %v44_v1 }
  0x21   :  { %160 = vmatprep.subr.mxu0 %v43_v3  ;;  %p219_p13 = por %p218_p12, %p217_p11 }
  0x22   :  { %161 = vmatpush3.msra.mxu0 %v43_v3 }
  0x23   :  { %162 = vmatprep.subr.mxu0 %v42_v4  ;;  %p220_p0 = pnand %p219_p13, %p213_p10 }
  0x24   :  { %163 = vmatpush3.msra.mxu0 %v42_v4 }
  0x25   :  { %165 = vmatmul.mubr.msk.f32.vlgmr.msra.gmra.mxu0 %vm46_vm0, %v41_v5 }
  0xe5   :  { %v166_v6 = vpop.f32.mrf.mxu0 }
  0xe6   :  { %129 = vst [vmem:[#allocation7 + $0x8] sm:$0xff] %v166_v6 }
  0xe7   :  { %v119_v7 = vpop.f32.mrf.mxu0 }
  0xe8   :  { %128 = vst [vmem:[#allocation7] sm:$0xff] %v119_v7 }
  0xe9   :  { %223 = shalt.err (!%p220_p0)
}
  0xea   :  { %141 = dma.vmem_to_hbm [thread:$0]  %s136_s1, 256, %s280_s2, [#allocation4], %s239_s12, %s239_s12, %s240_s13  }
  0xeb   :  { %236 = dma.done.wait [#allocation4], 256  }
  0xec   :  { %237 = vsyncadd [#allocation4], 4294967040 }
  0xed   :  { %145 = vsyncpa [#allocation3], 1 }
  0xee   :  { %146 = vsyncpa [#allocation6], 1 }
  0xef   :  { %147 = vsyncpa [#allocation4], 1 }

</bundles_post_ra>
